<compile_context>
chip_gen: v5e
topology: v5e:2x2
jax: 0.10.0
libtpu: 0.0.40
codegen_flags: <defaults>
</compile_context>

<pallas_src>
import functools

import jax
import jax.numpy as jnp
from jax.experimental import pallas as pl
from jax.experimental.pallas import tpu as pltpu


def _round_up(v, m):
    return ((v + m - 1) // m) * m


def _linear_sigmoid_kernel(x_ref, w_ref, b_ref, o_ref, acc_ref, *,
                           total_f, tile_f, needs_f_mask):
    # x_ref:   [tile_b, tile_f]  VMEM (streamed, natural layout, input dtype)
    # w_ref:   [1, tile_f]       VMEM lane-dense weight row (resident per k)
    # b_ref:   [1]               SMEM scalar bias
    # o_ref:   [tile_b, 1]       VMEM output block (resident across k)
    # acc_ref: [tile_b, 1]       f32 VMEM accumulator scratch
    k = pl.program_id(1)

    @pl.when(k == 0)
    def _init():
        acc_ref[...] = jnp.zeros_like(acc_ref)

    x = x_ref[...].astype(jnp.float32)       # up-cast right after load (v5e-safe)
    w = w_ref[...].astype(jnp.float32)

    if needs_f_mask:
        # Last F tile is partial: zero the out-of-bounds lanes so garbage never
        # feeds the reduction (static Python branch; no cost when F % tile_f == 0).
        col = jax.lax.broadcasted_iota(jnp.int32, x.shape, dimension=1)
        x = jnp.where((col + k * tile_f) < total_f, x, 0.0)

    # VPU broadcast-multiply + XLU lane reduce -> (tile_b, 1) partial sums.
    acc_ref[...] += jnp.sum(x * w, axis=-1, keepdims=True)

    @pl.when(k == pl.num_programs(1) - 1)
    def _finalize():
        z = acc_ref[...] + b_ref[0]
        o_ref[...] = jax.nn.sigmoid(z).astype(o_ref.dtype)   # EUP exp/recip


@functools.partial(jax.jit, static_argnames=("tile_bytes", "max_tile_f"))
def logistic_model(x, weight, bias, *, tile_bytes=6 * 1024 * 1024,
                   max_tile_f=8192):
    """x: [B, F] (f32 or bf16); weight: PyTorch-layout [1, F]; bias: [1].

    Returns sigmoid(x @ W^T + b): [B, 1].
    """
    B, F = x.shape
    out_dtype = jnp.result_type(x.dtype, weight.dtype)

    w_row = weight.reshape(1, F)             # lane-dense weight row (tiny)
    b_sc = bias.reshape(1).astype(jnp.float32)

    itemsize = jnp.dtype(x.dtype).itemsize

    # --- feature (reduction) tiling: only kicks in for very large F ---------
    if F <= max_tile_f:
        tile_f = F                           # full-extent block: no lane constraint
    else:
        tile_f = max_tile_f                  # multiple of 128
    f_tiles = pl.cdiv(F, tile_f)
    needs_f_mask = (F % tile_f) != 0

    # --- batch tiling: fill ~tile_bytes of x per tile (double-buffered) -----
    budget_rows = max(8, ((tile_bytes // (tile_f * itemsize)) // 8) * 8)
    tile_b = min(budget_rows, _round_up(B, 8))
    b_tiles = pl.cdiv(B, tile_b)

    out = pl.pallas_call(
        functools.partial(_linear_sigmoid_kernel, total_f=F, tile_f=tile_f,
                          needs_f_mask=needs_f_mask),
        out_shape=jax.ShapeDtypeStruct((B, 1), out_dtype),
        grid_spec=pltpu.PrefetchScalarGridSpec(
            num_scalar_prefetch=0,
            grid=(b_tiles, f_tiles),                         # reduction axis last
            in_specs=[
                pl.BlockSpec((tile_b, tile_f), lambda i, k: (i, k)),  # x (streamed)
                pl.BlockSpec((1, tile_f), lambda i, k: (0, k)),       # weight row
                pl.BlockSpec(memory_space=pltpu.MemorySpace.SMEM),    # bias scalar
            ],
            out_specs=pl.BlockSpec((tile_b, 1), lambda i, k: (i, 0)), # resident over k
            scratch_shapes=[pltpu.VMEM((tile_b, 1), jnp.float32)],    # accumulator
        ),
        compiler_params=pltpu.CompilerParams(
            dimension_semantics=("parallel", "arbitrary"),
            vmem_limit_bytes=48 * 1024 * 1024,   # > scoped defaults, < v7x 64 MiB phys
        ),
    )(x, w_row, b_sc)

    return out


if __name__ == "__main__":
    key = jax.random.PRNGKey(0)
    kx, kw, kb = jax.random.split(key, 3)

    B, F = 8, 6                                  # small: batch=8, n_input_features=6
    x = jax.random.normal(kx, (B, F), dtype=jnp.float32)

    # Deterministic "Linear(n_input_features, 1)" parameters (PyTorch layout [1, F], [1]).
    bound = 1.0 / jnp.sqrt(F)
    weight = jax.random.uniform(kw, (1, F), minval=-bound, maxval=bound, dtype=jnp.float32)
    bias = jax.random.uniform(kb, (1,), minval=-bound, maxval=bound, dtype=jnp.float32)

    y = logistic_model(x, weight, bias)
    y = jax.block_until_ready(y)

    # Reference check in plain JAX.
    y_ref = jax.nn.sigmoid(x @ weight.T + bias)
    assert y.shape == (B, 1)
    assert jnp.allclose(y, y_ref, atol=1e-5, rtol=1e-5)

    print("KERNEL_OK")
</pallas_src>

<mosaic_0001>
module attributes {stable_mosaic.version = 11 : i64} {
  func.func @_linear_sigmoid_kernel(%arg0: i32, %arg1: i32, %arg2: memref<8x6xf32, #tpu.memory_space<vmem>>, %arg3: memref<1x6xf32, #tpu.memory_space<vmem>>, %arg4: memref<1xf32, #tpu.memory_space<smem>>, %arg5: memref<8x1xf32, #tpu.memory_space<vmem>>, %arg6: memref<8x1xf32, #tpu.memory_space<vmem>>) attributes {dimension_semantics = [#tpu.dimension_semantics<parallel>, #tpu.dimension_semantics<arbitrary>], iteration_bounds = array<i64: 1, 1>, scalar_prefetch = 0 : i64, scratch_operands = 1 : i64, tpu.core_type = #tpu.core_type<tc>, window_params = [{transform_indices = @transform_0, window_bounds = array<i64: 8, 6>}, {transform_indices = @transform_1, window_bounds = array<i64: 1, 6>}, {transform_indices = @transform_2, window_bounds = array<i64: 1>}, {transform_indices = @transform_3, window_bounds = array<i64: 8, 1>}]} {
    %c0_i32 = arith.constant 0 : i32
    %0 = arith.cmpi eq, %arg1, %c0_i32 : i32
    %1 = arith.extui %0 : i1 to i32
    %c0_i32_0 = arith.constant 0 : i32
    %2 = arith.cmpi ne, %1, %c0_i32_0 : i32
    scf.if %2 {
      %cst_10 = arith.constant 0.000000e+00 : f32
      %15 = vector.broadcast %cst_10 : f32 to vector<8x1xf32>
      %c0_11 = arith.constant 0 : index
      %c0_12 = arith.constant 0 : index
      %16 = vector.load %arg6[%c0_11, %c0_12] : memref<8x1xf32, #tpu.memory_space<vmem>>, vector<8x1xf32>
      tpu.vector_store %arg6[%c0_11, %c0_12], %15 {strides = array<i32>} : memref<8x1xf32, #tpu.memory_space<vmem>>, vector<8x1xf32>,
    } else {
    }
    %c0 = arith.constant 0 : index
    %c0_1 = arith.constant 0 : index
    %3 = vector.load %arg2[%c0, %c0_1] : memref<8x6xf32, #tpu.memory_space<vmem>>, vector<8x6xf32>
    %c0_2 = arith.constant 0 : index
    %c0_3 = arith.constant 0 : index
    %4 = vector.load %arg3[%c0_2, %c0_3] : memref<1x6xf32, #tpu.memory_space<vmem>>, vector<1x6xf32>
    %c0_4 = arith.constant 0 : index
    %c0_5 = arith.constant 0 : index
    %5 = vector.load %arg6[%c0_4, %c0_5] : memref<8x1xf32, #tpu.memory_space<vmem>>, vector<8x1xf32>
    %6 = vector.broadcast %4 : vector<1x6xf32> to vector<8x6xf32>
    %7 = arith.mulf %3, %6 : vector<8x6xf32>
    %cst = arith.constant dense<0.000000e+00> : vector<8xf32>
    %8 = vector.multi_reduction <add>, %7, %cst [1] : vector<8x6xf32> to vector<8xf32>
    %9 = vector.shape_cast %8 : vector<8xf32> to vector<8x1xf32>
    %10 = arith.addf %5, %9 : vector<8x1xf32>
    %c0_6 = arith.constant 0 : index
    %c0_7 = arith.constant 0 : index
    %11 = vector.load %arg6[%c0_6, %c0_7] : memref<8x1xf32, #tpu.memory_space<vmem>>, vector<8x1xf32>
    tpu.vector_store %arg6[%c0_6, %c0_7], %10 {strides = array<i32>} : memref<8x1xf32, #tpu.memory_space<vmem>>, vector<8x1xf32>,
    %c0_i32_8 = arith.constant 0 : i32
    %12 = arith.cmpi eq, %arg1, %c0_i32_8 : i32
    %13 = arith.extui %12 : i1 to i32
    %c0_i32_9 = arith.constant 0 : i32
    %14 = arith.cmpi ne, %13, %c0_i32_9 : i32
    scf.if %14 {
      %c0_10 = arith.constant 0 : index
      %c0_11 = arith.constant 0 : index
      %15 = vector.load %arg6[%c0_10, %c0_11] : memref<8x1xf32, #tpu.memory_space<vmem>>, vector<8x1xf32>
      %c0_12 = arith.constant 0 : index
      %16 = memref.load %arg4[%c0_12] : memref<1xf32, #tpu.memory_space<smem>>
      %17 = vector.broadcast %16 : f32 to vector<8x1xf32>
      %18 = arith.addf %15, %17 : vector<8x1xf32>
      %19 = arith.negf %18 : vector<8x1xf32>
      %20 = math.exp %19 : vector<8x1xf32>
      %cst_13 = arith.constant 1.000000e+00 : f32
      %21 = vector.broadcast %cst_13 : f32 to vector<8x1xf32>
      %22 = arith.addf %21, %20 : vector<8x1xf32>
      %23 = arith.divf %21, %22 : vector<8x1xf32>
      %c0_14 = arith.constant 0 : index
      %c0_15 = arith.constant 0 : index
      %24 = vector.load %arg5[%c0_14, %c0_15] : memref<8x1xf32, #tpu.memory_space<vmem>>, vector<8x1xf32>
      tpu.vector_store %arg5[%c0_14, %c0_15], %23 {strides = array<i32>} : memref<8x1xf32, #tpu.memory_space<vmem>>, vector<8x1xf32>,
    } else {
    }
    return
  }
  func.func @transform_0(%arg0: i32, %arg1: i32) -> (i32, i32) {
    %c0_i32 = arith.constant 0 : i32
    return %arg0, %arg1 : i32, i32
  }
  func.func @transform_1(%arg0: i32, %arg1: i32) -> (i32, i32) {
    %c0_i32 = arith.constant 0 : i32
    %c0_i32_0 = arith.constant 0 : i32
    return %c0_i32, %arg1 : i32, i32
  }
  func.func @transform_2(%arg0: i32, %arg1: i32) -> i32 {
    %c0_i32 = arith.constant 0 : i32
    %c0_i32_0 = arith.constant 0 : i32
    return %c0_i32 : i32
  }
  func.func @transform_3(%arg0: i32, %arg1: i32) -> (i32, i32) {
    %c0_i32 = arith.constant 0 : i32
    %c0_i32_0 = arith.constant 0 : i32
    return %arg0, %c0_i32 : i32, i32
  }
}

</mosaic_0001>

<bundles_post_ra>
// kernel: logistic_model.1
= control target key start
LH: loop header
LB: loop body
LE: loop exit
PB: predicated region body
PF: predicated region fallthrough
CT: control target
= control target key end

     0   :  { %9 = vsyncpa [#allocation5], 0  ;;  %s115_s15 = smov [#allocation4]   ;;  %s152_s0 = inlined_call_operand.hbm [shape: f32[8,6], index: 0, kind: input, shape index: {}]   ;;  %s153_s1 = inlined_call_operand.vmem [shape: f32[1,6], index: 1, kind: input, shape index: {}]   ;;  %s154_s2 = inlined_call_operand.<no memory space> [shape: f32[1], index: 2, kind: input, shape index: {}]   ;;  %s155_s3 = inlined_call_operand.vmem [shape: f32[8,1], index: 3, kind: output, shape index: {}]  }
   0x1   :  { %s15_s14 = sshll.u32 %s152_s0, 4  ;;  %s17_s16 = sshll.u32 %s115_s15, 4  ;;  %s16_s14 = int_to_ptr.hbm [resolvable:$true] %s15_s14  ;;  %s18_s16 = int_to_ptr.vmem [resolvable:$true] %s17_s16 }
   0x2   :  { %20 = dma.hbm_to_vmem [thread:$0]  %s16_s14, 128, %s18_s16, [#allocation5]  }
   0x3   :  { %113 = dma.done.wait [#allocation5], 128  }
   0x4   :  { %114 = vsyncadd [#allocation5], 4294967168  ;;  %vm33_vm0 = vcmask 7168   ;;  %v116_v0 = vmov 0.0   ;;  %v35_v1 = vld [vmem:[#allocation4] sm:$0xff]  ;;  %vm42_vm1 = vcmask 48128   ;;  %v54_v8 = vstv %s154_s2 }
   0x5   :  { %34 = vst.msk [vmem:[#allocation2] sm:$0xff] %vm33_vm0, %v116_v0  ;;  %v84_v2 = vld [vmem:[%s153_s1] ss:$0 sm:$0xff] }
   0x6   :  { %v41_v3 = vmul.f32 %v84_v2, %v35_v1 }
   0x8   :  { %v43_v4 = vsel %vm42_vm1, %v41_v3, 0.0 }
   0x9   :  { %44 = vadd.xlane.f32.xlu0 %v43_v4 }
   0xc   :  { %v37_v5 = vld [vmem:[#allocation2] sm:$0xff] }
  0x7c   :  { %v45_v6 = vpop.xlane.xlu0 %44 }
  0x7d   :  { %v46_v7 = vadd.f32 %v45_v6, %v37_v5 }
  0x7f   :  { %48 = vst.msk [vmem:[#allocation2] sm:$0xff] %vm33_vm0, %v46_v7 }
  0x86   :  { %v52_v9 = vld [vmem:[#allocation2] sm:$0xff] }
  0x87   :  { %v55_v10 = vadd.f32 %v54_v8, %v52_v9 }
  0x89   :  { %v81_v11 = vmul.f32 -1.442695, %v55_v10 }
  0x8b   :  { %85 = vpow2.f32 %v81_v11 }
  0x91   :  { %v86_v12 = vpop.eup %85 }
  0x92   :  { %v59_v13 = vadd.f32 1.0, %v86_v12 }
  0x94   :  { %87 = vrcp.f32 %v59_v13  ;;  %v71_v17 = vand.u32 2147483648, %v59_v13  ;;  %v69_v19 = vand.u32 2147483647, %v59_v13  ;;  %vm65_vm3 = vweird.f32 %v59_v13 }
  0x96   :  { %v72_v21 = vor.u32 1.1754944e-38, %v71_v17  ;;  %vm70_vm5 = vcmp.eq.f32.partialorder %v69_v19, 8.507059e+37 }
  0x9a   :  { %v88_v14 = vpop.eup %87 }
  0x9b   :  { %v61_v15 = vmul.f32 %v88_v14, %v59_v13  ;;  %vm66_vm2 = vweird.f32 %v88_v14 }
  0x9c   :  { %vm67_vm4 = vmor %vm65_vm3, %vm66_vm2 }
  0x9d   :  { %v62_v16 = vsub.f32 1.0, %v61_v15 }
  0x9f   :  { %v63_v18 = vmul.f32 %v88_v14, %v62_v16 }
  0xa1   :  { %v64_v20 = vadd.f32 %v88_v14, %v63_v18 }
  0xa3   :  { %v68_v22 = vsel %vm67_vm4, %v88_v14, %v64_v20 }
  0xa4   :  { %v73_v23 = vsel %vm70_vm5, %v72_v21, %v68_v22 }
  0xa5   :  { %75 = vst.msk [vmem:[%s155_s3] sm:$0xff] %vm33_vm0, %v73_v23 }
  0xa6   :  { %80 = vsyncpa [#allocation5], 1 }

</bundles_post_ra>
